<compile_context>
chip_gen: v5e
topology: v5e:2x2
jax: 0.10.0
libtpu: 0.0.40
codegen_flags: <defaults>
</compile_context>

<pallas_src>
import functools

import jax
import jax.numpy as jnp
import numpy as np
from jax import lax
from jax.experimental import pallas as pl
from jax.experimental.pallas import tpu as pltpu


# ----------------------------------------------------------------------------
# Buffer construction — mirrors the PyTorch __init__.
# ----------------------------------------------------------------------------
def make_rope_caches(dim: int, max_seq_len: int = 1024):
    inv_freq = 1.0 / (10000.0 ** (jnp.arange(0, dim, 2, dtype=jnp.float32) / dim))
    t = jnp.arange(max_seq_len, dtype=jnp.float32)[:, None]          # [S, 1]
    freqs = t * inv_freq[None, :]                                     # [S, dim/2]
    freqs = jnp.concatenate([freqs, freqs], axis=-1)                  # [S, dim]
    return jnp.cos(freqs), jnp.sin(freqs)                             # each [S, dim] f32


# ----------------------------------------------------------------------------
# Kernel: refs are (tS, H*D) lane-dense blocks (batch dim squeezed).
# ----------------------------------------------------------------------------
def _rope_kernel(q_ref, k_ref, cos_ref, sin_ref, qo_ref, ko_ref, *,
                 n_heads: int, head_dim: int):
    half = head_dim // 2
    fused = q_ref.shape[-1]                       # n_heads * head_dim

    cos = cos_ref[...]                            # (tS, D) f32
    sin_s = sin_ref[...]                          # (tS, D) f32, rotate_half sign folded
    if n_heads > 1:
        # Tile caches to the fused lane width via minor-dim concat (cheap XLU
        # work; the cos/sin block is only re-fetched once per S-tile anyway).
        cos = jnp.concatenate([cos] * n_heads, axis=-1)
        sin_s = jnp.concatenate([sin_s] * n_heads, axis=-1)

    # rotate_half within each D-wide head group on the fused lane axis:
    #   rot[l] = x[l + half]  if (l % D) <  half   (paired with -sin via sin_s)
    #   rot[l] = x[l - half]  if (l % D) >= half
    lane = lax.broadcasted_iota(jnp.int32, q_ref.shape, 1)
    first_half = (lane % head_dim) < half

    def _apply(x_ref, o_ref):
        x = x_ref[...].astype(jnp.float32)
        rot = jnp.where(first_half,
                        pltpu.roll(x, shift=fused - half, axis=1),   # x[l + half]
                        pltpu.roll(x, shift=half, axis=1))           # x[l - half]
        o_ref[...] = (x * cos + rot * sin_s).astype(o_ref.dtype)

    _apply(q_ref, qo_ref)
    _apply(k_ref, ko_ref)


def _pick_seq_tile(seq_len: int, fused_width: int, itemsize: int,
                   target_block_bytes: int) -> int:
    """Fixed, budgeted sequence tile (multiple of the sublane pack)."""
    pack = 8 * max(1, 4 // itemsize)              # f32: 8 rows, bf16: 16, int8: 32
    row_bytes = max(1, fused_width * itemsize)
    t = (target_block_bytes // row_bytes) // pack * pack
    t = max(pack, t)
    if t >= seq_len:
        return seq_len                            # single block == full extent (always legal)
    return t


# ----------------------------------------------------------------------------
# Wrapper: expects caches with the rotate_half sign already folded into sin.
# ----------------------------------------------------------------------------
def apply_rotary_embedding(q, k, cos_cached, sin_signed_cached, *,
                           target_block_bytes: int = 1 << 20):
    B, S, H, D = q.shape
    assert k.shape == q.shape, "q and k must have identical shapes"
    assert D % 2 == 0, "head_dim must be even for RoPE"
    assert cos_cached.shape[0] >= S, "sequence length exceeds RoPE cache"
    assert cos_cached.shape[-1] == D and sin_signed_cached.shape[-1] == D

    L = H * D
    qf = q.reshape(B, S, L)                       # free: H, D are contiguous
    kf = k.reshape(B, S, L)
    cos = cos_cached[:S].astype(jnp.float32)      # (S, D) f32
    sin_s = sin_signed_cached[:S].astype(jnp.float32)

    tS = _pick_seq_tile(S, L, q.dtype.itemsize, target_block_bytes)
    n_s = pl.cdiv(S, tS)

    qk_spec = pl.BlockSpec((pl.Squeezed(), tS, L), lambda s, b: (b, s, 0))
    cs_spec = pl.BlockSpec((tS, D), lambda s, b: (s, 0))

    kernel = functools.partial(_rope_kernel, n_heads=H, head_dim=D)

    qo, ko = pl.pallas_call(
        kernel,
        out_shape=(jax.ShapeDtypeStruct((B, S, L), q.dtype),
                   jax.ShapeDtypeStruct((B, S, L), k.dtype)),
        grid=(n_s, B),                            # B innermost -> cos/sin stay resident
        in_specs=[qk_spec, qk_spec, cs_spec, cs_spec],
        out_specs=(qk_spec, qk_spec),
        compiler_params=pltpu.CompilerParams(
            dimension_semantics=("parallel", "parallel"),
            # 4 q/k streams x 2 buffers x ~1 MiB + f32 temporaries; fits
            # comfortably on v5e/v6e (128 MiB) and v7x (64 MiB physical).
            vmem_limit_bytes=48 * 1024 * 1024),
    )(qf, kf, cos, sin_s)
    return qo.reshape(B, S, H, D), ko.reshape(B, S, H, D)


class RotaryEmbedding:
    """Mirrors the PyTorch module; sign fold / f32 caches hoisted to init."""

    def __init__(self, dim: int, max_seq_len: int = 1024):
        self.dim = dim
        self.max_seq_len = max_seq_len
        cos, sin = make_rope_caches(dim, max_seq_len)
        sign = jnp.where(jnp.arange(dim) < dim // 2, -1.0, 1.0).astype(jnp.float32)
        self.cos_cached = cos                     # (max_S, D) f32
        self.sin_cached = sin                     # (max_S, D) f32 (unsigned, for refs)
        self.sin_signed = sin * sign[None, :]     # rotate_half sign folded in

    def __call__(self, q, k, **kwargs):
        return apply_rotary_embedding(q, k, self.cos_cached, self.sin_signed, **kwargs)


# ----------------------------------------------------------------------------
# Pure-JAX reference (mirrors the PyTorch code) for verification.
# ----------------------------------------------------------------------------
def _rotate_half_ref(x):
    half = x.shape[-1] // 2
    return jnp.concatenate([-x[..., half:], x[..., :half]], axis=-1)


def _rope_ref(q, k, cos_cached, sin_cached):
    S = q.shape[1]
    cos = cos_cached[:S][None, :, None, :]        # [1, S, 1, D]
    sin = sin_cached[:S][None, :, None, :]
    q_embed = q * cos + _rotate_half_ref(q) * sin
    k_embed = k * cos + _rotate_half_ref(k) * sin
    return q_embed, k_embed


if __name__ == "__main__":
    key = jax.random.PRNGKey(0)
    dim, max_seq_len = 32, 64
    rope = RotaryEmbedding(dim, max_seq_len)

    # --- test 1: f32, B=2, S=8, H=4, D=32 (H*D = 128 -> fully lane-dense) ---
    B, S, H, D = 2, 8, 4, dim
    kq, kk, key = jax.random.split(key, 3)
    q = jax.random.normal(kq, (B, S, H, D), dtype=jnp.float32)
    k = jax.random.normal(kk, (B, S, H, D), dtype=jnp.float32)
    q_emb, k_emb = rope(q, k)
    jax.block_until_ready((q_emb, k_emb))
    q_r, k_r = _rope_ref(q, k, rope.cos_cached, rope.sin_cached)
    np.testing.assert_allclose(np.asarray(q_emb), np.asarray(q_r), rtol=1e-5, atol=1e-5)
    np.testing.assert_allclose(np.asarray(k_emb), np.asarray(k_r), rtol=1e-5, atol=1e-5)

    # --- test 2: ragged multi-tile path (S=20 with tS=8 -> 3 s-blocks) -------
    B2, S2 = 1, 20
    kq, kk, key = jax.random.split(key, 3)
    q2 = jax.random.normal(kq, (B2, S2, H, D), dtype=jnp.float32)
    k2 = jax.random.normal(kk, (B2, S2, H, D), dtype=jnp.float32)
    q2_emb, k2_emb = rope(q2, k2, target_block_bytes=4096)
    jax.block_until_ready((q2_emb, k2_emb))
    q2_r, k2_r = _rope_ref(q2, k2, rope.cos_cached, rope.sin_cached)
    np.testing.assert_allclose(np.asarray(q2_emb), np.asarray(q2_r), rtol=1e-5, atol=1e-5)
    np.testing.assert_allclose(np.asarray(k2_emb), np.asarray(k2_r), rtol=1e-5, atol=1e-5)

    # --- test 3: bf16 inputs (f32 math in-kernel, bf16 out) ------------------
    qb, kb = q.astype(jnp.bfloat16), k.astype(jnp.bfloat16)
    qb_emb, kb_emb = rope(qb, kb)
    jax.block_until_ready((qb_emb, kb_emb))
    assert qb_emb.dtype == jnp.bfloat16 and kb_emb.dtype == jnp.bfloat16
    qb_r, kb_r = _rope_ref(qb.astype(jnp.float32), kb.astype(jnp.float32),
                           rope.cos_cached, rope.sin_cached)
    np.testing.assert_allclose(np.asarray(qb_emb, dtype=np.float32), np.asarray(qb_r),
                               rtol=2e-2, atol=2e-2)
    np.testing.assert_allclose(np.asarray(kb_emb, dtype=np.float32), np.asarray(kb_r),
                               rtol=2e-2, atol=2e-2)

    print("KERNEL_OK")
</pallas_src>

<mosaic_0001>
module attributes {stable_mosaic.version = 11 : i64} {
  func.func @_rope_kernel(%arg0: i32, %arg1: i32, %arg2: memref<1x8x128xf32, #tpu.memory_space<vmem>>, %arg3: memref<1x8x128xf32, #tpu.memory_space<vmem>>, %arg4: memref<8x32xf32, #tpu.memory_space<vmem>>, %arg5: memref<8x32xf32, #tpu.memory_space<vmem>>, %arg6: memref<1x8x128xf32, #tpu.memory_space<vmem>>, %arg7: memref<1x8x128xf32, #tpu.memory_space<vmem>>) attributes {dimension_semantics = [#tpu.dimension_semantics<parallel>, #tpu.dimension_semantics<parallel>], iteration_bounds = array<i64: 1, 2>, scalar_prefetch = 0 : i64, scratch_operands = 0 : i64, tpu.core_type = #tpu.core_type<tc>, window_params = [{transform_indices = @transform_0, window_bounds = array<i64: 1, 8, 128>}, {transform_indices = @transform_1, window_bounds = array<i64: 1, 8, 128>}, {transform_indices = @transform_2, window_bounds = array<i64: 8, 32>}, {transform_indices = @transform_3, window_bounds = array<i64: 8, 32>}, {transform_indices = @transform_4, window_bounds = array<i64: 1, 8, 128>}, {transform_indices = @transform_5, window_bounds = array<i64: 1, 8, 128>}]} {
    %c0 = arith.constant 0 : index
    %c0_0 = arith.constant 0 : index
    %0 = vector.load %arg4[%c0, %c0_0] : memref<8x32xf32, #tpu.memory_space<vmem>>, vector<8x32xf32>
    %c0_1 = arith.constant 0 : index
    %c0_2 = arith.constant 0 : index
    %1 = vector.load %arg5[%c0_1, %c0_2] : memref<8x32xf32, #tpu.memory_space<vmem>>, vector<8x32xf32>
    %2 = tpu.concatenate %0, %0, %0, %0 in 1 : vector<8x32xf32>, vector<8x32xf32>, vector<8x32xf32>, vector<8x32xf32> -> vector<8x128xf32>
    %3 = tpu.concatenate %1, %1, %1, %1 in 1 : vector<8x32xf32>, vector<8x32xf32>, vector<8x32xf32>, vector<8x32xf32> -> vector<8x128xf32>
    %4 = tpu.iota {dimensions = array<i32: 1>} : vector<8x128xi32>
    %c32_i32 = arith.constant 32 : i32
    %c0_i32 = arith.constant 0 : i32
    %5 = arith.cmpi eq, %c32_i32, %c0_i32 : i32
    %c1_i32 = arith.constant 1 : i32
    %6 = arith.select %5, %c1_i32, %c32_i32 : i32
    %7 = vector.broadcast %6 : i32 to vector<8x128xi32>
    %8 = arith.remsi %4, %7 : vector<8x128xi32>
    %c0_i32_3 = arith.constant 0 : i32
    %9 = vector.broadcast %c0_i32_3 : i32 to vector<8x128xi32>
    %10 = arith.cmpi ne, %8, %9 : vector<8x128xi32>
    %c0_i32_4 = arith.constant 0 : i32
    %11 = vector.broadcast %c0_i32_4 : i32 to vector<8x128xi32>
    %12 = arith.cmpi slt, %8, %11 : vector<8x128xi32>
    %c0_i32_5 = arith.constant 0 : i32
    %13 = arith.cmpi slt, %6, %c0_i32_5 : i32
    %14 = vector.broadcast %13 : i1 to vector<8x128xi1>
    %15 = vector.broadcast %14 : vector<8x128xi1> to vector<8x128xi1>
    %16 = arith.xori %12, %15 : vector<8x128xi1>
    %17 = arith.andi %16, %10 : vector<8x128xi1>
    %18 = vector.broadcast %6 : i32 to vector<8x128xi32>
    %19 = arith.addi %8, %18 : vector<8x128xi32>
    %20 = arith.select %17, %19, %8 : vector<8x128xi1>, vector<8x128xi32>
    %c16_i32 = arith.constant 16 : i32
    %21 = vector.broadcast %c16_i32 : i32 to vector<8x128xi32>
    %22 = arith.cmpi slt, %20, %21 : vector<8x128xi32>
    %c0_6 = arith.constant 0 : index
    %c0_7 = arith.constant 0 : index
    %c0_8 = arith.constant 0 : index
    %23 = vector.load %arg2[%c0_6, %c0_7, %c0_8] : memref<1x8x128xf32, #tpu.memory_space<vmem>>, vector<1x8x128xf32>
    %24 = vector.shape_cast %23 : vector<1x8x128xf32> to vector<8x128xf32>
    %c112_i32 = arith.constant 112 : i32
    %25 = tpu.dynamic_rotate %24 by %c112_i32 dim 1 : vector<8x128xf32>, i32 -> vector<8x128xf32>
    %c16_i32_9 = arith.constant 16 : i32
    %26 = tpu.dynamic_rotate %24 by %c16_i32_9 dim 1 : vector<8x128xf32>, i32 -> vector<8x128xf32>
    %27 = arith.select %22, %25, %26 : vector<8x128xi1>, vector<8x128xf32>
    %28 = arith.mulf %24, %2 : vector<8x128xf32>
    %29 = arith.mulf %27, %3 : vector<8x128xf32>
    %30 = arith.addf %28, %29 : vector<8x128xf32>
    %c0_10 = arith.constant 0 : index
    %c0_11 = arith.constant 0 : index
    %c0_12 = arith.constant 0 : index
    %31 = vector.load %arg6[%c0_10, %c0_11, %c0_12] : memref<1x8x128xf32, #tpu.memory_space<vmem>>, vector<1x8x128xf32>
    %32 = vector.shape_cast %31 : vector<1x8x128xf32> to vector<8x128xf32>
    %33 = vector.shape_cast %30 : vector<8x128xf32> to vector<1x8x128xf32>
    tpu.vector_store %arg6[%c0_10, %c0_11, %c0_12], %33 {strides = array<i32>} : memref<1x8x128xf32, #tpu.memory_space<vmem>>, vector<1x8x128xf32>,
    %c0_13 = arith.constant 0 : index
    %c0_14 = arith.constant 0 : index
    %c0_15 = arith.constant 0 : index
    %34 = vector.load %arg3[%c0_13, %c0_14, %c0_15] : memref<1x8x128xf32, #tpu.memory_space<vmem>>, vector<1x8x128xf32>
    %35 = vector.shape_cast %34 : vector<1x8x128xf32> to vector<8x128xf32>
    %c112_i32_16 = arith.constant 112 : i32
    %36 = tpu.dynamic_rotate %35 by %c112_i32_16 dim 1 : vector<8x128xf32>, i32 -> vector<8x128xf32>
    %c16_i32_17 = arith.constant 16 : i32
    %37 = tpu.dynamic_rotate %35 by %c16_i32_17 dim 1 : vector<8x128xf32>, i32 -> vector<8x128xf32>
    %38 = arith.select %22, %36, %37 : vector<8x128xi1>, vector<8x128xf32>
    %39 = arith.mulf %35, %2 : vector<8x128xf32>
    %40 = arith.mulf %38, %3 : vector<8x128xf32>
    %41 = arith.addf %39, %40 : vector<8x128xf32>
    %c0_18 = arith.constant 0 : index
    %c0_19 = arith.constant 0 : index
    %c0_20 = arith.constant 0 : index
    %42 = vector.load %arg7[%c0_18, %c0_19, %c0_20] : memref<1x8x128xf32, #tpu.memory_space<vmem>>, vector<1x8x128xf32>
    %43 = vector.shape_cast %42 : vector<1x8x128xf32> to vector<8x128xf32>
    %44 = vector.shape_cast %41 : vector<8x128xf32> to vector<1x8x128xf32>
    tpu.vector_store %arg7[%c0_18, %c0_19, %c0_20], %44 {strides = array<i32>} : memref<1x8x128xf32, #tpu.memory_space<vmem>>, vector<1x8x128xf32>,
    return
  }
  func.func @transform_0(%arg0: i32, %arg1: i32) -> (i32, i32, i32) {
    %c0_i32 = arith.constant 0 : i32
    %c0_i32_0 = arith.constant 0 : i32
    return %arg1, %arg0, %c0_i32 : i32, i32, i32
  }
  func.func @transform_1(%arg0: i32, %arg1: i32) -> (i32, i32, i32) {
    %c0_i32 = arith.constant 0 : i32
    %c0_i32_0 = arith.constant 0 : i32
    return %arg1, %arg0, %c0_i32 : i32, i32, i32
  }
  func.func @transform_2(%arg0: i32, %arg1: i32) -> (i32, i32) {
    %c0_i32 = arith.constant 0 : i32
    %c0_i32_0 = arith.constant 0 : i32
    return %arg0, %c0_i32 : i32, i32
  }
  func.func @transform_3(%arg0: i32, %arg1: i32) -> (i32, i32) {
    %c0_i32 = arith.constant 0 : i32
    %c0_i32_0 = arith.constant 0 : i32
    return %arg0, %c0_i32 : i32, i32
  }
  func.func @transform_4(%arg0: i32, %arg1: i32) -> (i32, i32, i32) {
    %c0_i32 = arith.constant 0 : i32
    %c0_i32_0 = arith.constant 0 : i32
    return %arg1, %arg0, %c0_i32 : i32, i32, i32
  }
  func.func @transform_5(%arg0: i32, %arg1: i32) -> (i32, i32, i32) {
    %c0_i32 = arith.constant 0 : i32
    %c0_i32_0 = arith.constant 0 : i32
    return %arg1, %arg0, %c0_i32 : i32, i32, i32
  }
}

</mosaic_0001>

<bundles_post_ra>
// kernel: tpu_custom_call.1
= control target key start
LH: loop header
LB: loop body
LE: loop exit
PB: predicated region body
PF: predicated region fallthrough
CT: control target
= control target key end

     0   :  { %s1218_s0 = inlined_call_operand.hbm [shape: f32[2,8,128], index: 0, kind: input, shape index: {}]   ;;  %s1219_s1 = inlined_call_operand.hbm [shape: f32[2,8,128], index: 1, kind: input, shape index: {}]   ;;  %s1220_s2 = inlined_call_operand.hbm [shape: f32[8,32], index: 2, kind: input, shape index: {}]   ;;  %s1221_s3 = inlined_call_operand.hbm [shape: f32[8,32], index: 3, kind: input, shape index: {}]   ;;  %s1222_s4 = inlined_call_operand.hbm [shape: f32[2,8,128], index: 4, kind: output, shape index: {0}]   ;;  %s1223_s5 = inlined_call_operand.hbm [shape: f32[2,8,128], index: 5, kind: output, shape index: {1}]  }
   0x1   :  { %1227 = sst [smem:[#allocation23_spill]] %s1220_s2 }
   0x2   :  { %1228 = sst [smem:[#allocation24_spill]] %s1221_s3 }
   0x3   :  { %11 = vsyncpa [#allocation3], 0 }
   0x4   :  { %13 = vsyncpa [#allocation3 + $0x1], 0 }
   0x5   :  { %14 = vsyncpa [#allocation6], 0 }
   0x6   :  { %16 = vsyncpa [#allocation6 + $0x1], 0 }
   0x7   :  { %17 = vsyncpa [#allocation9], 0 }
   0x8   :  { %18 = vsyncpa [#allocation4], 0 }
   0x9   :  { %20 = vsyncpa [#allocation4 + $0x1], 0 }
   0xa   :  { %21 = vsyncpa [#allocation12], 0 }
   0xb   :  { %23 = vsyncpa [#allocation12 + $0x1], 0  ;;  %s1027_s18 = smov 0   ;;  %s1029_s19 = smov 0  }
   0xc   :  { %s1031_s20 = smov 0   ;;  %s1033_s21 = smov 0  }
   0xd   :  { %s1035_s22 = smov 0   ;;  %s1037_s23 = smov 0  }
   0xe LB: > { %1229 = sst [smem:[#allocation19_spill]] %s976_s20  ;;  %s1058_s24 = sadd.s32 4294967295, %s988_s23   ;;  %s988_s23 = sphi %s1037_s23, %s29_s23   ;;  %s984_s22 = sphi %s1035_s22, %s1245_s22   ;;  %s980_s21 = sphi %s1033_s21, %s1244_s21   ;;  %s976_s20 = sphi %s1031_s20, %s1243_s20   ;;  %s972_s19 = sphi %s1029_s19, %s1247_s19   ;;  %s968_s18 = sphi %s1027_s18, %s1246_s18  }
   0xf   : > { %1230 = sst [smem:[#allocation20_spill]] %s984_s22  ;;  %s622_s25 = sadd.s32 4294967294, %s988_s23  }
  0x10   : > { %p63_p0 = scmp.ne.s32.totalorder %s972_s19, %s968_s18  ;;  %p64_p1 = scmp.eq.s32.totalorder %s1058_s24, 0 }
  0x11   : > { %p169_p2 = scmp.eq.s32.totalorder %s1058_s24, 1  ;;  %p175_p3 = scmp.eq.s32.totalorder %s622_s25, 1 }
  0x12   : > { %p1067_p4 = por %p64_p1, %p63_p0  ;;  %p623_p5 = scmp.ge.s32.totalorder %s988_s23, 1 }
  0x13   : > { %p1072_p6 = por %p175_p3, %p63_p0  ;;  %p210_p7 = scmp.lt.s32.totalorder %s988_s23, 3 }
  0x14   : > { %s1233_s2 = sld [smem:[#allocation23_spill]]  ;;  %p626_p9 = scmp.ge.s32.totalorder %s988_s23, 2 }
  0x15   : > { %p1080_p8 = pnand %p623_p5, %p210_p7  ;;  %s990_s7 = smov [#allocation7]  }
  0x16   : > { %s226_s8 = sshll.u32 %s990_s7, 4  ;;  %s1235_s3 = sld [smem:[#allocation24_spill]]  ;;  %s227_s8 = int_to_ptr.vmem [resolvable:$true] %s226_s8 }
  0x17   : > { %p660_p10 = pneg %p1080_p8  ;;  %s991_s12 = smov [#allocation8]  }
  0x18   : > { %s240_s13 = sshll.u32 %s991_s12, 4  ;;  %s38_s14 = sadd.s32 1, %s984_s22  ;;  %s241_s13 = int_to_ptr.vmem [resolvable:$true] %s240_s13 }
  0x19   : > { %p661_p11 = pnand %p660_p10, %p64_p1  ;;  %s50_s15 = sadd.s32 1, %s976_s20 }
  0x1a   : > { %s224_s30 = sshll.u32 %s1233_s2, 4  ;;  %p39_p12 = scmp.ge.s32.totalorder %s38_s14, 2  ;;  %s225_s30 = int_to_ptr.hbm [resolvable:$true] %s224_s30 }
  0x1b   : > { %663 = dma.hbm_to_vmem [thread:$0]  (!%p661_p11), %s225_s30, 128, %s227_s8, [#allocation6]  }
  0x1c   : > { %s238_s11 = sshll.u32 %s1235_s3, 4  ;;  %p57_p13 = scmp.ne.s32.totalorder %s976_s20, %s972_s19  ;;  %s239_s11 = int_to_ptr.hbm [resolvable:$true] %s238_s11 }
  0x1d   : > { %666 = dma.hbm_to_vmem [thread:$0]  (!%p661_p11), %s239_s11, 128, %s241_s13, [#allocation9]  }
  0x1e   : > { %p58_p0 = scmp.eq.s32.totalorder %s988_s23, 0  ;;  %p683_p3 = scmp.lt.s32.totalorder %s988_s23, 2 }
  0x1f   : > { %s1249_s14 = smov (%p39_p12, %s38_s14), 0  ;;  %p1106_p7 = por %p169_p2, %p57_p13 }
  0x20   : > { %1236 = sst [smem:[#allocation21_spill]] %s1249_s14  ;;  %p1100_p5 = por %p58_p0, %p57_p13 }
  0x21   : > { %s45_s25 = ssub.s32 %s984_s22, %s1249_s14  ;;  %s251_s28 = sand.u32 1, %s976_s20  }
  0x22   : > { %p48_p10 = scmp.eq.s32.totalorder %s45_s25, 0  ;;  %s627_s29 = sshll.u32 %s251_s28, 3 }
  0x23   : > { %s628_s30 = sshll.u32 %s984_s22, 3  ;;  %s255_s12 = scalar_lea.vmem [#allocation2], %s627_s29 }
  0x24   : > { %s1115_s7 = scalar_select %p48_p10, %s976_s20, %s50_s15  }
  0x25   : > { %s260_s10 = scalar_lea.hbm %s1218_s0, %s628_s30  ;;  %s264_s13 = sshll.u32 %s255_s12, 4  ;;  %s265_s13 = int_to_ptr.vmem [resolvable:$true] %s264_s13 }
  0x26   : > { %1239 = sst [smem:[#allocation22_spill]] %s1115_s7  ;;  %s262_s11 = sshll.u32 %s260_s10, 4  ;;  %s263_s11 = int_to_ptr.hbm [resolvable:$true] %s262_s11 }
  0x27   : > { %p668_p2 = pnand %p683_p3, %p1100_p5  ;;  %s280_s25 = scalar_lea.hbm %s1219_s1, %s628_s30 }
  0x28   : > { %s271_s14 = sand.u32 1, %s988_s23   ;;  %s252_s22 = scalar_lea.sflag [#allocation3], %s251_s28 }
  0x29   : > { %670 = dma.hbm_to_vmem [thread:$0]  (!%p668_p2), %s263_s11, 128, %s265_s13, %s252_s22  }
  0x2a   : > { %s282_s15 = sshll.u32 %s280_s25, 4  ;;  %s275_s7 = scalar_lea.vmem [#allocation5], %s627_s29  ;;  %s283_s15 = int_to_ptr.hbm [resolvable:$true] %s282_s15 }
  0x2b   : > { %s284_s20 = sshll.u32 %s275_s7, 4  ;;  %s272_s8 = scalar_lea.sflag [#allocation6], %s271_s14  ;;  %s285_s20 = int_to_ptr.vmem [resolvable:$true] %s284_s20 }
  0x2c   : > { %673 = dma.hbm_to_vmem [thread:$0]  (!%p668_p2), %s283_s15, 128, %s285_s20, %s272_s8  }
  0x2d   : > { %293 = sbr.rel (%p1080_p8) target bundleno = 212 (0xd4), region = 36  ;;  %s1131_s16 = sand.u32 (!%p1080_p8), 1, %s972_s19  }
  0x2e   : > { %s1134_s2 = sshll.u32 (!%p1080_p8), %s1131_s16, 3  ;;  %s296_s3 = scalar_lea.sflag (!%p1080_p8), [#allocation3], %s1131_s16 }
  0x2f   : > { %s299_s22 = scalar_lea.vmem (!%p1080_p8), [#allocation2], %s1134_s2 }
  0x32   : > { %943 = dma.done.wait (%p1067_p4), %s296_s3, 128  }
  0x33   : > { %945 = vsyncadd (%p1067_p4), %s296_s3, 4294967168  ;;  %s305_s20 = sand.u32 1, %s1058_s24   ;;  %s309_s14 = scalar_lea.vmem [#allocation5], %s1134_s2 }
  0x34   : > { %s306_s6 = scalar_lea.sflag [#allocation6], %s305_s20 }
  0x35   : > { %947 = dma.done.wait (%p1067_p4), %s306_s6, 128  }
  0x36   : > { %949 = vsyncadd (%p1067_p4), %s306_s6, 4294967168 }
  0x37   : > { %951 = dma.done.wait (%p64_p1), [#allocation6], 128  }
  0x38   : > { %953 = vsyncadd (%p64_p1), [#allocation6], 4294967168 }
  0x39   : > { %955 = dma.done.wait (%p64_p1), [#allocation9], 128  }
  0x3a   : > { %957 = vsyncadd (%p64_p1), [#allocation9], 4294967168  ;;  %v357_v0 = vld [vmem:[#allocation7] sm:$0xff]  ;;  %s992_s28 = smov 64   ;;  %s993_s29 = smov 32   ;;  %v358_v1 = vld [vmem:[#allocation8] sm:$0xff]  ;;  %v388_v6 = vlaneseq }
  0x3b   : > { %363 = vrot.lane.b32.xlu1 %v357_v0, %s992_s28  ;;  %360 = vrot.lane.b32.xlu0 %v357_v0, %s993_s29  ;;  %s994_s30 = smov 96   ;;  %v403_v2 = vld [vmem:[%s299_s22] sm:$0xff]  ;;  %s995_s26 = smov 16   ;;  %v413_v3 = vld [vmem:[%s309_s14] sm:$0xff]  ;;  %vm369_vm0 = vcmask 261120   ;;  %vm371_vm1 = vcmask 523264  }
  0x3c   : > { %366 = vrot.lane.b32.xlu2 %v357_v0, %s994_s30  ;;  %s996_s7 = smov 112   ;;  %v389_v8 = vand.u32 127, %v388_v6  ;;  %s640_s24 = sshll.u32 %s980_s21, 3  ;;  %vm373_vm2 = vcmask 785408  }
  0x3d   : > { %s440_s11 = scalar_lea.hbm %s1222_s4, %s640_s24  ;;  %s349_s21 = scalar_lea.vmem [#allocation10], %s1134_s2 }
  0x3e   : > { %v394_v12 = vand.u32 31, %v389_v8  ;;  %s442_s12 = sshll.u32 %s349_s21, 4  ;;  %s444_s13 = sshll.u32 %s440_s11, 4  ;;  %s443_s12 = int_to_ptr.vmem [resolvable:$true] %s442_s12  ;;  %s445_s13 = int_to_ptr.hbm [resolvable:$true] %s444_s13 }
  0x3f   : > { %s455_s8 = scalar_lea.hbm %s1223_s5, %s640_s24  ;;  %s424_s3 = scalar_lea.sflag [#allocation4], %s1131_s16 }
  0x40   : > { %vm1157_vm3 = vcmp.lt.s32.totalorder %v394_v12, 16  ;;  %s876_s22 = sshra.s32 %s445_s13, 4  ;;  %s877_s22 = int_to_ptr.hbm [resolvable:$true] %s876_s22 }
  0x41   : > { %s878_s20 = scalar_lea.hbm %s877_s22, 8  ;;  %p883_p11 = scmp.lt.s32.totalorder %s877_s22, %s1222_s4 }
  0x42   : > { %p879_p1 = scmp.ne.s32.totalorder %s877_s22, %s878_s20 }
  0x43   : > { %379 = vrot.lane.b32.xlu1 %v358_v1, %s992_s28  ;;  %376 = vrot.lane.b32.xlu0 %v358_v1, %s993_s29  ;;  %s882_s28 = scalar_lea.hbm %s1222_s4, 16 }
  0x44   : > { %382 = vrot.lane.b32.xlu2 %v358_v1, %s994_s30  ;;  %p880_p4 = pnand %p879_p1, %p1106_p7  ;;  %p884_p12 = scmp.lt.s32.totalorder %s882_s28, %s878_s20 }
  0x46   : > { %p881_p8 = pneg %p880_p4  ;;  %p885_p13 = por %p884_p12, %p883_p11 }
  0x48   : > { %p886_p0 = pnand %p885_p13, %p881_p8 }
  0x4b   : > { %406 = vrot.lane.b32.xlu1 %v403_v2, %s995_s26  ;;  %404 = vrot.lane.b32.xlu0 %v403_v2, %s996_s7 }
  0x4c   : > { %414 = vrot.lane.b32.xlu2 %v413_v3, %s996_s7 }
  0x53   : > { %416 = vrot.lane.b32.xlu0 %v413_v3, %s995_s26 }
  0x96   : > { %v367_v7 = vpop.permute.xlu2 %366 }
  0x9e   : > { %v383_v15 = vpop.permute.xlu2 %382 }
  0xa6   : > { %v415_v26 = vpop.permute.xlu2 %414 }
  0xad   : > { %v364_v4 = vpop.permute.xlu1 %363  ;;  %v361_v5 = vpop.permute.xlu0 %360 }
  0xae   : > { %v370_v11 = vsel %vm369_vm0, %v357_v0, %v361_v5 }
  0xaf   : > { %v372_v14 = vsel %vm371_vm1, %v370_v11, %v364_v4 }
  0xb0   : > { %v374_v18 = vsel %vm373_vm2, %v372_v14, %v367_v7 }
  0xb1   : > { %v409_v23 = vmul.f32 %v403_v2, %v374_v18 }
  0xb5   : > { %v380_v9 = vpop.permute.xlu1 %379  ;;  %v377_v10 = vpop.permute.xlu0 %376 }
  0xb6   : > { %v385_v13 = vsel %vm369_vm0, %v358_v1, %v377_v10 }
  0xb7   : > { %v386_v16 = vsel %vm371_vm1, %v385_v13, %v380_v9 }
  0xb8   : > { %v387_v21 = vsel %vm373_vm2, %v386_v16, %v383_v15 }
  0xbd   : > { %v407_v19 = vpop.permute.xlu1 %406  ;;  %v405_v20 = vpop.permute.xlu0 %404 }
  0xbe   : > { %v408_v22 = vsel %vm1157_vm3, %v405_v20, %v407_v19 }
  0xbf   : > { %v410_v24 = vmul.f32 %v408_v22, %v387_v21 }
  0xc1   : > { %v411_v25 = vadd.f32 %v410_v24, %v409_v23 }
  0xc3   : > { %412 = vst [vmem:[%s349_s21] sm:$0xff] %v411_v25 }
  0xc4   : > { %889 = shalt.err (!%p886_p0)
}
  0xc5   : > { %656 = dma.vmem_to_hbm [thread:$0]  (%p1106_p7), %s443_s12, 128, %s445_s13, %s424_s3   ;;  %v417_v27 = vpop.permute.xlu0 %416  ;;  %v419_v29 = vmul.f32 %v413_v3, %v374_v18 }
  0xc6   : > { %v418_v28 = vsel %vm1157_vm3, %v415_v26, %v417_v27  ;;  %s356_s26 = scalar_lea.vmem [#allocation11], %s1134_s2  ;;  %s459_s24 = sshll.u32 %s455_s8, 4  ;;  %s460_s24 = int_to_ptr.hbm [resolvable:$true] %s459_s24 }
  0xc7   : > { %s457_s7 = sshll.u32 %s356_s26, 4  ;;  %v420_v30 = vmul.f32 %v418_v28, %v387_v21  ;;  %s429_s9 = scalar_lea.sflag [#allocation12], %s1131_s16  ;;  %s458_s7 = int_to_ptr.vmem [resolvable:$true] %s457_s7 }
  0xc8   : > { %s904_s10 = sshra.s32 %s460_s24, 4  ;;  %s910_s2 = scalar_lea.hbm %s1223_s5, 16  ;;  %s905_s10 = int_to_ptr.hbm [resolvable:$true] %s904_s10 }
  0xc9   : > { %v421_v31 = vadd.f32 %v420_v30, %v419_v29  ;;  %s906_s11 = scalar_lea.hbm %s905_s10, 8  ;;  %p911_p2 = scmp.lt.s32.totalorder %s905_s10, %s1223_s5 }
  0xca   : > { %p907_p3 = scmp.ne.s32.totalorder %s905_s10, %s906_s11  ;;  %p912_p1 = scmp.lt.s32.totalorder %s910_s2, %s906_s11 }
  0xcb   : > { %422 = vst [vmem:[%s356_s26] sm:$0xff] %v421_v31 }
  0xcc   : > { %p908_p5 = pnand %p907_p3, %p1106_p7  ;;  %p913_p4 = por %p912_p1, %p911_p2 }
  0xce   : > { %p909_p10 = pneg %p908_p5 }
  0xd0   : > { %p914_p8 = pnand %p913_p4, %p909_p10 }
  0xd2   : > { %917 = shalt.err (!%p914_p8)
}
  0xd3   : > { %657 = dma.vmem_to_hbm [thread:$0]  (%p1106_p7), %s458_s7, 128, %s460_s24, %s429_s9  }
  0xd4 PF: > { %s471_s16 = sand.u32 1, %s968_s18   ;;  %p675_p11 = pnand %p626_p9, %p1072_p6 }
  0xd5   : > { %s472_s15 = scalar_lea.sflag [#allocation4], %s471_s16 }
  0xd6   : > { %p676_p12 = pneg %p675_p11 }
  0xd8   : > { %959 = dma.done.wait (%p676_p12), %s472_s15, 128  }
  0xd9   : > { %961 = vsyncadd (%p676_p12), %s472_s15, 4294967168  ;;  %s482_s8 = scalar_lea.sflag [#allocation12], %s471_s16 }
  0xda   : > { %963 = dma.done.wait (%p676_p12), %s482_s8, 128  }
  0xdb   : > { %965 = vsyncadd (%p676_p12), %s482_s8, 4294967168  ;;  %s29_s23 = sadd.s32 1, %s988_s23   ;;  %s1242_s17 = sld [smem:[#allocation19_spill]] }
  0xdc   : > { %p26_p13 = scmp.ge.s32.totalorder %s29_s23, 4   ;;  %s1243_s20 = sld [smem:[#allocation22_spill]] }
  0xdd   : > { %s1244_s21 = sld [smem:[#allocation20_spill]]  ;;  %s1246_s18 = smov %s972_s19 }
  0xde   : > { %s1245_s22 = sld [smem:[#allocation21_spill]]  ;;  %28 = sbr.rel (!%p26_p13) target bundleno = 14 (0xe), region = 121 }
  0xe1   : > { %s1247_s19 = smov %s1242_s17 }
  0xe3   :  { %488 = vsyncpa [#allocation3], 1 }
  0xe4   :  { %490 = vsyncpa [#allocation3 + $0x1], 1 }
  0xe5   :  { %491 = vsyncpa [#allocation6], 1 }
  0xe6   :  { %493 = vsyncpa [#allocation6 + $0x1], 1 }
  0xe7   :  { %494 = vsyncpa [#allocation9], 1 }
  0xe8   :  { %495 = vsyncpa [#allocation4], 1 }
  0xe9   :  { %497 = vsyncpa [#allocation4 + $0x1], 1 }
  0xea   :  { %498 = vsyncpa [#allocation12], 1 }
  0xeb   :  { %500 = vsyncpa [#allocation12 + $0x1], 1 }

</bundles_post_ra>
